<compile_context>
chip_gen: v7x
topology: tpu7x:2x2x1
jax: 0.10.0
libtpu: 0.0.40
codegen_flags: <defaults>
</compile_context>

<pallas_src>
import functools

import jax
import jax.numpy as jnp
import numpy as np
from jax import lax
from jax.experimental import pallas as pl
from jax.experimental.pallas import tpu as pltpu

# my binary corner index c = c1*4 + c2*2 + c3 (lo/hi of dims 1,2,3)
# -> index of the matching PyTorch weights1..weights8 parameter.
_BIN_TO_PT = (0, 3, 2, 6, 1, 5, 4, 7)


# --------------------------------------------------------------------------
# Pallas kernel
# --------------------------------------------------------------------------
def _spectral_corner_kernel(xr_ref, xi_ref, wr_ref, wi_ref, or_ref, oi_ref,
                            *, batch, cin, cout, lane_chunk):
    # xr/xi_ref: (1, batch*cin, TM)  rows b*cin + i   (f32 real / imag)
    # wr/wi_ref: (1, cin*cout, TM)   rows i*cout + o
    # or/oi_ref: (1, batch*cout, TM) rows b*cout + o
    tm = xr_ref.shape[-1]
    n_chunks = tm // lane_chunk

    def compute_chunk(col):
        cols = pl.ds(col, lane_chunk)

        def accumulate(i, acc_r, acc_i):
            # Weight rows loaded once per input channel (hoisted out of b-loop).
            wr = wr_ref[0, pl.ds(i * cout, cout), cols]            # (Cout, LC)
            wi = wi_ref[0, pl.ds(i * cout, cout), cols]
            new_r, new_i = [], []
            for b in range(batch):
                xr = xr_ref[0, pl.ds(b * cin + i, 1), cols]        # (1, LC)
                xi = xi_ref[0, pl.ds(b * cin + i, 1), cols]
                # 4-multiply complex product, accumulated in place.
                ar = acc_r[b] + xr * wr
                ar = ar - xi * wi
                ai = acc_i[b] + xr * wi
                ai = ai + xi * wr
                new_r.append(ar)
                new_i.append(ai)
            return new_r, new_i

        acc_r = [jnp.zeros((cout, lane_chunk), jnp.float32) for _ in range(batch)]
        acc_i = [jnp.zeros((cout, lane_chunk), jnp.float32) for _ in range(batch)]

        if cin <= 8:
            # Small channel counts: static unroll (full ILP, tiny code size).
            for i in range(cin):
                acc_r, acc_i = accumulate(i, acc_r, acc_i)
        else:
            # Realistic FNO channel counts: partial unroll keeps ILP without
            # the register-pressure / code-size cliff of a full unroll.
            def body(i, carry):
                ar, ai = carry
                ar, ai = accumulate(i, list(ar), list(ai))
                return tuple(ar), tuple(ai)
            acc_r, acc_i = lax.fori_loop(0, cin, body,
                                         (tuple(acc_r), tuple(acc_i)),
                                         unroll=4)
            acc_r, acc_i = list(acc_r), list(acc_i)

        # One lane-dense store per plane per chunk (rows = full B*Cout extent).
        or_ref[0, :, cols] = jnp.concatenate(acc_r, axis=0)
        oi_ref[0, :, cols] = jnp.concatenate(acc_i, axis=0)

    if n_chunks == 1:
        compute_chunk(0)
    else:
        @pl.loop(0, n_chunks)
        def _(t):
            compute_chunk(pl.multiple_of(t * lane_chunk, lane_chunk))


# --------------------------------------------------------------------------
# Tiling / VMEM budgets
# --------------------------------------------------------------------------
def _vmem_budgets():
    """Generation-gated (block budget, vmem_limit) in bytes.

    v5e / v6e: 128 MiB physical VMEM -> large lane-dense tiles.
    v7x (or unknown): 64 MiB per TensorCore -> keep double-buffered blocks
    well under half of it."""
    cap = None
    try:
        cap = getattr(pltpu.get_tpu_info(), "vmem_capacity_bytes", None)
    except Exception:
        cap = None
    if cap is not None and cap >= 100 * 1024 * 1024:           # v5e / v6e
        return 56 * 1024 * 1024, 96 * 1024 * 1024
    return 36 * 1024 * 1024, 48 * 1024 * 1024                  # v7x / unknown


def _choose_mode_tile(M, rows_x, rows_w, rows_o, block_budget):
    """Lane tile TM (multiple of 128) and padded extent Mp (multiple of TM)."""
    # f32, real + imag planes for x, w and out blocks, double-buffered.
    bytes_per_lane = 4 * 2 * (rows_x + rows_w + rows_o)
    max_tm = max(128, (block_budget // (2 * bytes_per_lane)) // 128 * 128)
    max_tm = min(max_tm, 8192)
    m128 = pl.cdiv(M, 128) * 128
    if m128 <= max_tm:
        tm = m128
        # If the whole mode axis would be one huge block, split it so the
        # pipeline / v7x's 2 TensorCores see more grid steps.
        if tm >= 2048:
            tm = pl.cdiv(pl.cdiv(tm, 2), 128) * 128
    else:
        tm = max_tm
    mp = pl.cdiv(M, tm) * tm
    return tm, mp


def _lane_chunk(tm):
    for lc in (512, 384, 256, 128):
        if tm % lc == 0:
            return lc
    return 128


def _corner_mul_pallas(xr, xi, wr, wi, *, batch, cin, cout, tm, vmem_limit):
    """xr/xi: (8, B*Cin, Mp) f32, wr/wi: (8, Cin*Cout, Mp) f32
    -> (out_r, out_i), each (8, B*Cout, Mp) f32."""
    n_corners, rows_x, mp = xr.shape
    rows_w = wr.shape[1]
    rows_o = batch * cout
    n_t = mp // tm
    lane_chunk = _lane_chunk(tm)

    kernel = functools.partial(_spectral_corner_kernel, batch=batch, cin=cin,
                               cout=cout, lane_chunk=lane_chunk)
    x_spec = pl.BlockSpec((1, rows_x, tm), lambda c, t: (c, 0, t))
    w_spec = pl.BlockSpec((1, rows_w, tm), lambda c, t: (c, 0, t))
    o_spec = pl.BlockSpec((1, rows_o, tm), lambda c, t: (c, 0, t))
    o_shape = jax.ShapeDtypeStruct((n_corners, rows_o, mp), jnp.float32)

    return pl.pallas_call(
        kernel,
        out_shape=(o_shape, o_shape),
        grid_spec=pltpu.PrefetchScalarGridSpec(
            num_scalar_prefetch=0,
            grid=(n_corners, n_t),
            in_specs=[x_spec, x_spec, w_spec, w_spec],
            out_specs=(o_spec, o_spec),
        ),
        compiler_params=pltpu.CompilerParams(
            dimension_semantics=("parallel", "parallel"),
            vmem_limit_bytes=vmem_limit),
    )(xr, xi, wr, wi)


# --------------------------------------------------------------------------
# Wrapper glue (XLA): FFTs, corner gather/scatter, packing
# --------------------------------------------------------------------------
def _corner_slices(N1, N2, N3, m1, m2, m3):
    lo1, hi1 = slice(0, m1), slice(N1 - m1, N1)
    lo2, hi2 = slice(0, m2), slice(N2 - m2, N2)
    lo3, hi3 = slice(0, m3), slice(N3 - m3, N3)
    # weights1..weights8 order in the PyTorch module.
    return [(lo1, lo2, lo3), (hi1, lo2, lo3), (lo1, hi2, lo3), (lo1, lo2, hi3),
            (hi1, hi2, lo3), (hi1, lo2, hi3), (lo1, hi2, hi3), (hi1, hi2, hi3)]


def _gather_corners(x_ft, modes):
    """(B,Cin,N1,N2,N3,Nr) complex -> (8, B*Cin, M) complex; corners in binary
    (lo/hi dim1, dim2, dim3) order; rows in NATURAL b*Cin + i order; modes
    flattened row-major (m1, m2, m3, m4)."""
    m1, m2, m3, m4 = modes
    B, Cin, N1, N2, N3, _ = x_ft.shape
    a = jnp.concatenate([x_ft[:, :, :m1], x_ft[:, :, N1 - m1:]], axis=2)
    a = jnp.concatenate([a[:, :, :, :m2], a[:, :, :, N2 - m2:]], axis=3)
    a = jnp.concatenate([a[:, :, :, :, :m3], a[:, :, :, :, N3 - m3:]], axis=4)
    a = a[..., :m4]                                       # (B,Cin,2m1,2m2,2m3,m4)
    a = a.reshape(B, Cin, 2, m1, 2, m2, 2, m3, m4)
    a = a.transpose(2, 4, 6, 0, 1, 3, 5, 7, 8)            # (2,2,2,B,Cin,m1,m2,m3,m4)
    return a.reshape(8, B * Cin, m1 * m2 * m3 * m4)


def _assemble_out_ft(blk, spatial, modes):
    """blk: (B,Cout,2,m1,2,m2,2,m3,m4) complex corner blocks (binary order)
    -> out_ft (B,Cout,N1,N2,N3,Nr), zeros outside the retained modes."""
    N1, N2, N3, Nr = spatial
    m1, m2, m3, m4 = modes
    B, Cout = blk.shape[:2]
    dt = blk.dtype
    if N1 >= 2 * m1 and N2 >= 2 * m2 and N3 >= 2 * m3:
        lo, hi = blk[:, :, 0], blk[:, :, 1]
        gap = jnp.zeros((B, Cout, N1 - 2 * m1) + lo.shape[3:], dt)
        a = jnp.concatenate([lo, gap, hi], axis=2)        # (B,Cout,N1,2,m2,2,m3,m4)
        lo, hi = a[:, :, :, 0], a[:, :, :, 1]
        gap = jnp.zeros((B, Cout, N1, N2 - 2 * m2) + lo.shape[4:], dt)
        a = jnp.concatenate([lo, gap, hi], axis=3)        # (B,Cout,N1,N2,2,m3,m4)
        lo, hi = a[:, :, :, :, 0], a[:, :, :, :, 1]
        gap = jnp.zeros((B, Cout, N1, N2, N3 - 2 * m3) + lo.shape[5:], dt)
        a = jnp.concatenate([lo, gap, hi], axis=4)        # (B,Cout,N1,N2,N3,m4)
        return jnp.pad(a, ((0, 0),) * 5 + ((0, Nr - m4),))
    # Overlapping corners (2*m > N): sequential writes in PyTorch order so
    # later corners overwrite earlier ones, matching module semantics.
    out_ft = jnp.zeros((B, Cout, N1, N2, N3, Nr), dt)
    for j, (s1, s2, s3) in enumerate(_corner_slices(N1, N2, N3, m1, m2, m3)):
        c = _BIN_TO_PT.index(j)
        c1, c2, c3 = (c >> 2) & 1, (c >> 1) & 1, c & 1
        out_ft = out_ft.at[:, :, s1, s2, s3, :m4].set(blk[:, :, c1, :, c2, :, c3])
    return out_ft


def prepare_weights(weights):
    """PyTorch weights1..8 stacked (8, Cin, Cout, m1, m2, m3, m4) complex64 ->
    (w_real, w_imag), each f32 (8, Cin*Cout, M) in binary-corner order with
    rows i*Cout + o.  Call ONCE outside the jitted forward (hoists the corner
    reorder + complex split off the per-call path)."""
    w_bin = jnp.take(weights, jnp.asarray(_BIN_TO_PT), axis=0)
    _, cin, cout, m1, m2, m3, m4 = w_bin.shape
    w_flat = w_bin.reshape(8, cin * cout, m1 * m2 * m3 * m4)
    return (jnp.real(w_flat).astype(jnp.float32),
            jnp.imag(w_flat).astype(jnp.float32))


def spectral_conv4d(x, w_r, w_i, modes):
    """x: (B, Cin, N1, N2, N3, N4) float32.
    w_r, w_i: f32 (8, Cin*Cout, M) from prepare_weights()."""
    m1, m2, m3, m4 = modes
    B, Cin, N1, N2, N3, N4 = x.shape
    Nr = N4 // 2 + 1
    assert m4 <= Nr, f"modes4={m4} exceeds rfft length {Nr}"
    assert m1 <= N1 and m2 <= N2 and m3 <= N3, "modes exceed spatial extent"
    M = m1 * m2 * m3 * m4
    Cout = w_r.shape[1] // Cin
    assert w_r.shape == (8, Cin * Cout, M), w_r.shape

    x_ft = jnp.fft.rfftn(x, axes=(-4, -3, -2, -1))        # (B,Cin,N1,N2,N3,Nr) c64
    xc = _gather_corners(x_ft, modes)                     # (8, B*Cin, M) complex

    rows_x, rows_w, rows_o = B * Cin, Cin * Cout, B * Cout
    block_budget, vmem_limit = _vmem_budgets()
    tm, mp = _choose_mode_tile(M, rows_x, rows_w, rows_o, block_budget)

    pad = ((0, 0), (0, 0), (0, mp - M))
    xr = jnp.pad(jnp.real(xc).astype(jnp.float32), pad)
    xi = jnp.pad(jnp.imag(xc).astype(jnp.float32), pad)
    wrp = jnp.pad(w_r, pad)
    wip = jnp.pad(w_i, pad)

    out_r, out_i = _corner_mul_pallas(xr, xi, wrp, wip, batch=B, cin=Cin,
                                      cout=Cout, tm=tm, vmem_limit=vmem_limit)

    out_c = jax.lax.complex(out_r[..., :M], out_i[..., :M])
    out_c = out_c.reshape(2, 2, 2, B, Cout, m1, m2, m3, m4)
    out_c = out_c.transpose(3, 4, 0, 5, 1, 6, 2, 7, 8)    # (B,Cout,2,m1,2,m2,2,m3,m4)

    out_ft = _assemble_out_ft(out_c, (N1, N2, N3, Nr), modes)
    y = jnp.fft.irfftn(out_ft, s=(N1, N2, N3, N4), axes=(-4, -3, -2, -1))
    return y.astype(jnp.float32)


def spectral_conv4d_reference(x, weights, modes):
    """Independent pure-JAX mirror of the PyTorch module (no Pallas)."""
    m1, m2, m3, m4 = modes
    B, Cin, N1, N2, N3, N4 = x.shape
    Cout = weights.shape[2]
    Nr = N4 // 2 + 1
    x_ft = jnp.fft.rfftn(x, axes=(-4, -3, -2, -1))
    out_ft = jnp.zeros((B, Cout, N1, N2, N3, Nr), jnp.complex64)
    for j, (s1, s2, s3) in enumerate(_corner_slices(N1, N2, N3, m1, m2, m3)):
        blk = jnp.einsum('bixyzt,ioxyzt->boxyzt',
                         x_ft[:, :, s1, s2, s3, :m4], weights[j])
        out_ft = out_ft.at[:, :, s1, s2, s3, :m4].set(blk)
    y = jnp.fft.irfftn(out_ft, s=(N1, N2, N3, N4), axes=(-4, -3, -2, -1))
    return y.astype(jnp.float32)


if __name__ == "__main__":
    # Small shapes consistent with the module.
    B, Cin, Cout = 2, 4, 4
    modes = (3, 3, 3, 3)
    N1 = N2 = N3 = N4 = 6          # rfft last dim = 4 >= modes4

    key = jax.random.PRNGKey(0)
    kx, kwr, kwi = jax.random.split(key, 3)

    x = jax.random.normal(kx, (B, Cin, N1, N2, N3, N4), dtype=jnp.float32)

    # torch.rand(..., dtype=cfloat): real & imag uniform [0,1), scaled.
    scale = 1.0 / (Cin * Cout)
    wshape = (8, Cin, Cout) + modes
    w_real = scale * jax.random.uniform(kwr, wshape, dtype=jnp.float32)
    w_imag = scale * jax.random.uniform(kwi, wshape, dtype=jnp.float32)
    weights = (w_real + 1j * w_imag).astype(jnp.complex64)

    # Hoisted once, outside the jitted forward (corner reorder + real/imag split).
    w_r, w_i = prepare_weights(weights)

    fwd = jax.jit(functools.partial(spectral_conv4d, modes=modes))
    ref = jax.jit(functools.partial(spectral_conv4d_reference, modes=modes))

    y = fwd(x, w_r, w_i)
    jax.block_until_ready(y)
    y_ref = ref(x, weights)
    jax.block_until_ready(y_ref)

    assert y.shape == (B, Cout, N1, N2, N3, N4), y.shape
    np.testing.assert_allclose(np.asarray(y), np.asarray(y_ref),
                               rtol=1e-4, atol=1e-5)
    print("KERNEL_OK")
</pallas_src>

<mosaic_0001>
module attributes {stable_mosaic.version = 11 : i64} {
  func.func @_spectral_corner_kernel(%arg0: i32, %arg1: i32, %arg2: memref<1x8x128xf32, #tpu.memory_space<vmem>>, %arg3: memref<1x8x128xf32, #tpu.memory_space<vmem>>, %arg4: memref<1x16x128xf32, #tpu.memory_space<vmem>>, %arg5: memref<1x16x128xf32, #tpu.memory_space<vmem>>, %arg6: memref<1x8x128xf32, #tpu.memory_space<vmem>>, %arg7: memref<1x8x128xf32, #tpu.memory_space<vmem>>) attributes {dimension_semantics = [#tpu.dimension_semantics<parallel>, #tpu.dimension_semantics<parallel>], iteration_bounds = array<i64: 8, 1>, scalar_prefetch = 0 : i64, scratch_operands = 0 : i64, tpu.core_type = #tpu.core_type<tc>, window_params = [{transform_indices = @transform_0, window_bounds = array<i64: 1, 8, 128>}, {transform_indices = @transform_1, window_bounds = array<i64: 1, 8, 128>}, {transform_indices = @transform_2, window_bounds = array<i64: 1, 16, 128>}, {transform_indices = @transform_3, window_bounds = array<i64: 1, 16, 128>}, {transform_indices = @transform_4, window_bounds = array<i64: 1, 8, 128>}, {transform_indices = @transform_5, window_bounds = array<i64: 1, 8, 128>}]} {
    %cst = arith.constant 0.000000e+00 : f32
    %0 = vector.broadcast %cst : f32 to vector<4x128xf32>
    %cst_0 = arith.constant 0.000000e+00 : f32
    %1 = vector.broadcast %cst_0 : f32 to vector<4x128xf32>
    %cst_1 = arith.constant 0.000000e+00 : f32
    %2 = vector.broadcast %cst_1 : f32 to vector<4x128xf32>
    %cst_2 = arith.constant 0.000000e+00 : f32
    %3 = vector.broadcast %cst_2 : f32 to vector<4x128xf32>
    %c0 = arith.constant 0 : index
    %c0_3 = arith.constant 0 : index
    %c0_4 = arith.constant 0 : index
    %4 = vector.load %arg4[%c0, %c0_3, %c0_4] : memref<1x16x128xf32, #tpu.memory_space<vmem>>, vector<1x4x128xf32>
    %5 = vector.shape_cast %4 : vector<1x4x128xf32> to vector<4x128xf32>
    %c0_5 = arith.constant 0 : index
    %c0_6 = arith.constant 0 : index
    %c0_7 = arith.constant 0 : index
    %6 = vector.load %arg5[%c0_5, %c0_6, %c0_7] : memref<1x16x128xf32, #tpu.memory_space<vmem>>, vector<1x4x128xf32>
    %7 = vector.shape_cast %6 : vector<1x4x128xf32> to vector<4x128xf32>
    %c0_8 = arith.constant 0 : index
    %c0_9 = arith.constant 0 : index
    %c0_10 = arith.constant 0 : index
    %8 = vector.load %arg2[%c0_8, %c0_9, %c0_10] : memref<1x8x128xf32, #tpu.memory_space<vmem>>, vector<1x1x128xf32>
    %9 = vector.shape_cast %8 : vector<1x1x128xf32> to vector<1x128xf32>
    %c0_11 = arith.constant 0 : index
    %c0_12 = arith.constant 0 : index
    %c0_13 = arith.constant 0 : index
    %10 = vector.load %arg3[%c0_11, %c0_12, %c0_13] : memref<1x8x128xf32, #tpu.memory_space<vmem>>, vector<1x1x128xf32>
    %11 = vector.shape_cast %10 : vector<1x1x128xf32> to vector<1x128xf32>
    %12 = vector.broadcast %9 : vector<1x128xf32> to vector<4x128xf32>
    %13 = arith.mulf %12, %5 : vector<4x128xf32>
    %14 = arith.addf %0, %13 : vector<4x128xf32>
    %15 = vector.broadcast %11 : vector<1x128xf32> to vector<4x128xf32>
    %16 = arith.mulf %15, %7 : vector<4x128xf32>
    %17 = arith.subf %14, %16 : vector<4x128xf32>
    %18 = vector.broadcast %9 : vector<1x128xf32> to vector<4x128xf32>
    %19 = arith.mulf %18, %7 : vector<4x128xf32>
    %20 = arith.addf %2, %19 : vector<4x128xf32>
    %21 = vector.broadcast %11 : vector<1x128xf32> to vector<4x128xf32>
    %22 = arith.mulf %21, %5 : vector<4x128xf32>
    %23 = arith.addf %20, %22 : vector<4x128xf32>
    %c0_14 = arith.constant 0 : index
    %c4 = arith.constant 4 : index
    %c0_15 = arith.constant 0 : index
    %24 = vector.load %arg2[%c0_14, %c4, %c0_15] : memref<1x8x128xf32, #tpu.memory_space<vmem>>, vector<1x1x128xf32>
    %25 = vector.shape_cast %24 : vector<1x1x128xf32> to vector<1x128xf32>
    %c0_16 = arith.constant 0 : index
    %c4_17 = arith.constant 4 : index
    %c0_18 = arith.constant 0 : index
    %26 = vector.load %arg3[%c0_16, %c4_17, %c0_18] : memref<1x8x128xf32, #tpu.memory_space<vmem>>, vector<1x1x128xf32>
    %27 = vector.shape_cast %26 : vector<1x1x128xf32> to vector<1x128xf32>
    %28 = vector.broadcast %25 : vector<1x128xf32> to vector<4x128xf32>
    %29 = arith.mulf %28, %5 : vector<4x128xf32>
    %30 = arith.addf %1, %29 : vector<4x128xf32>
    %31 = vector.broadcast %27 : vector<1x128xf32> to vector<4x128xf32>
    %32 = arith.mulf %31, %7 : vector<4x128xf32>
    %33 = arith.subf %30, %32 : vector<4x128xf32>
    %34 = vector.broadcast %25 : vector<1x128xf32> to vector<4x128xf32>
    %35 = arith.mulf %34, %7 : vector<4x128xf32>
    %36 = arith.addf %3, %35 : vector<4x128xf32>
    %37 = vector.broadcast %27 : vector<1x128xf32> to vector<4x128xf32>
    %38 = arith.mulf %37, %5 : vector<4x128xf32>
    %39 = arith.addf %36, %38 : vector<4x128xf32>
    %c0_19 = arith.constant 0 : index
    %c4_20 = arith.constant 4 : index
    %c0_21 = arith.constant 0 : index
    %40 = vector.load %arg4[%c0_19, %c4_20, %c0_21] : memref<1x16x128xf32, #tpu.memory_space<vmem>>, vector<1x4x128xf32>
    %41 = vector.shape_cast %40 : vector<1x4x128xf32> to vector<4x128xf32>
    %c0_22 = arith.constant 0 : index
    %c4_23 = arith.constant 4 : index
    %c0_24 = arith.constant 0 : index
    %42 = vector.load %arg5[%c0_22, %c4_23, %c0_24] : memref<1x16x128xf32, #tpu.memory_space<vmem>>, vector<1x4x128xf32>
    %43 = vector.shape_cast %42 : vector<1x4x128xf32> to vector<4x128xf32>
    %c0_25 = arith.constant 0 : index
    %c1 = arith.constant 1 : index
    %c0_26 = arith.constant 0 : index
    %44 = vector.load %arg2[%c0_25, %c1, %c0_26] : memref<1x8x128xf32, #tpu.memory_space<vmem>>, vector<1x1x128xf32>
    %45 = vector.shape_cast %44 : vector<1x1x128xf32> to vector<1x128xf32>
    %c0_27 = arith.constant 0 : index
    %c1_28 = arith.constant 1 : index
    %c0_29 = arith.constant 0 : index
    %46 = vector.load %arg3[%c0_27, %c1_28, %c0_29] : memref<1x8x128xf32, #tpu.memory_space<vmem>>, vector<1x1x128xf32>
    %47 = vector.shape_cast %46 : vector<1x1x128xf32> to vector<1x128xf32>
    %48 = vector.broadcast %45 : vector<1x128xf32> to vector<4x128xf32>
    %49 = arith.mulf %48, %41 : vector<4x128xf32>
    %50 = arith.addf %17, %49 : vector<4x128xf32>
    %51 = vector.broadcast %47 : vector<1x128xf32> to vector<4x128xf32>
    %52 = arith.mulf %51, %43 : vector<4x128xf32>
    %53 = arith.subf %50, %52 : vector<4x128xf32>
    %54 = vector.broadcast %45 : vector<1x128xf32> to vector<4x128xf32>
    %55 = arith.mulf %54, %43 : vector<4x128xf32>
    %56 = arith.addf %23, %55 : vector<4x128xf32>
    %57 = vector.broadcast %47 : vector<1x128xf32> to vector<4x128xf32>
    %58 = arith.mulf %57, %41 : vector<4x128xf32>
    %59 = arith.addf %56, %58 : vector<4x128xf32>
    %c0_30 = arith.constant 0 : index
    %c5 = arith.constant 5 : index
    %c0_31 = arith.constant 0 : index
    %60 = vector.load %arg2[%c0_30, %c5, %c0_31] : memref<1x8x128xf32, #tpu.memory_space<vmem>>, vector<1x1x128xf32>
    %61 = vector.shape_cast %60 : vector<1x1x128xf32> to vector<1x128xf32>
    %c0_32 = arith.constant 0 : index
    %c5_33 = arith.constant 5 : index
    %c0_34 = arith.constant 0 : index
    %62 = vector.load %arg3[%c0_32, %c5_33, %c0_34] : memref<1x8x128xf32, #tpu.memory_space<vmem>>, vector<1x1x128xf32>
    %63 = vector.shape_cast %62 : vector<1x1x128xf32> to vector<1x128xf32>
    %64 = vector.broadcast %61 : vector<1x128xf32> to vector<4x128xf32>
    %65 = arith.mulf %64, %41 : vector<4x128xf32>
    %66 = arith.addf %33, %65 : vector<4x128xf32>
    %67 = vector.broadcast %63 : vector<1x128xf32> to vector<4x128xf32>
    %68 = arith.mulf %67, %43 : vector<4x128xf32>
    %69 = arith.subf %66, %68 : vector<4x128xf32>
    %70 = vector.broadcast %61 : vector<1x128xf32> to vector<4x128xf32>
    %71 = arith.mulf %70, %43 : vector<4x128xf32>
    %72 = arith.addf %39, %71 : vector<4x128xf32>
    %73 = vector.broadcast %63 : vector<1x128xf32> to vector<4x128xf32>
    %74 = arith.mulf %73, %41 : vector<4x128xf32>
    %75 = arith.addf %72, %74 : vector<4x128xf32>
    %c0_35 = arith.constant 0 : index
    %c8 = arith.constant 8 : index
    %c0_36 = arith.constant 0 : index
    %76 = vector.load %arg4[%c0_35, %c8, %c0_36] : memref<1x16x128xf32, #tpu.memory_space<vmem>>, vector<1x4x128xf32>
    %77 = vector.shape_cast %76 : vector<1x4x128xf32> to vector<4x128xf32>
    %c0_37 = arith.constant 0 : index
    %c8_38 = arith.constant 8 : index
    %c0_39 = arith.constant 0 : index
    %78 = vector.load %arg5[%c0_37, %c8_38, %c0_39] : memref<1x16x128xf32, #tpu.memory_space<vmem>>, vector<1x4x128xf32>
    %79 = vector.shape_cast %78 : vector<1x4x128xf32> to vector<4x128xf32>
    %c0_40 = arith.constant 0 : index
    %c2 = arith.constant 2 : index
    %c0_41 = arith.constant 0 : index
    %80 = vector.load %arg2[%c0_40, %c2, %c0_41] : memref<1x8x128xf32, #tpu.memory_space<vmem>>, vector<1x1x128xf32>
    %81 = vector.shape_cast %80 : vector<1x1x128xf32> to vector<1x128xf32>
    %c0_42 = arith.constant 0 : index
    %c2_43 = arith.constant 2 : index
    %c0_44 = arith.constant 0 : index
    %82 = vector.load %arg3[%c0_42, %c2_43, %c0_44] : memref<1x8x128xf32, #tpu.memory_space<vmem>>, vector<1x1x128xf32>
    %83 = vector.shape_cast %82 : vector<1x1x128xf32> to vector<1x128xf32>
    %84 = vector.broadcast %81 : vector<1x128xf32> to vector<4x128xf32>
    %85 = arith.mulf %84, %77 : vector<4x128xf32>
    %86 = arith.addf %53, %85 : vector<4x128xf32>
    %87 = vector.broadcast %83 : vector<1x128xf32> to vector<4x128xf32>
    %88 = arith.mulf %87, %79 : vector<4x128xf32>
    %89 = arith.subf %86, %88 : vector<4x128xf32>
    %90 = vector.broadcast %81 : vector<1x128xf32> to vector<4x128xf32>
    %91 = arith.mulf %90, %79 : vector<4x128xf32>
    %92 = arith.addf %59, %91 : vector<4x128xf32>
    %93 = vector.broadcast %83 : vector<1x128xf32> to vector<4x128xf32>
    %94 = arith.mulf %93, %77 : vector<4x128xf32>
    %95 = arith.addf %92, %94 : vector<4x128xf32>
    %c0_45 = arith.constant 0 : index
    %c6 = arith.constant 6 : index
    %c0_46 = arith.constant 0 : index
    %96 = vector.load %arg2[%c0_45, %c6, %c0_46] : memref<1x8x128xf32, #tpu.memory_space<vmem>>, vector<1x1x128xf32>
    %97 = vector.shape_cast %96 : vector<1x1x128xf32> to vector<1x128xf32>
    %c0_47 = arith.constant 0 : index
    %c6_48 = arith.constant 6 : index
    %c0_49 = arith.constant 0 : index
    %98 = vector.load %arg3[%c0_47, %c6_48, %c0_49] : memref<1x8x128xf32, #tpu.memory_space<vmem>>, vector<1x1x128xf32>
    %99 = vector.shape_cast %98 : vector<1x1x128xf32> to vector<1x128xf32>
    %100 = vector.broadcast %97 : vector<1x128xf32> to vector<4x128xf32>
    %101 = arith.mulf %100, %77 : vector<4x128xf32>
    %102 = arith.addf %69, %101 : vector<4x128xf32>
    %103 = vector.broadcast %99 : vector<1x128xf32> to vector<4x128xf32>
    %104 = arith.mulf %103, %79 : vector<4x128xf32>
    %105 = arith.subf %102, %104 : vector<4x128xf32>
    %106 = vector.broadcast %97 : vector<1x128xf32> to vector<4x128xf32>
    %107 = arith.mulf %106, %79 : vector<4x128xf32>
    %108 = arith.addf %75, %107 : vector<4x128xf32>
    %109 = vector.broadcast %99 : vector<1x128xf32> to vector<4x128xf32>
    %110 = arith.mulf %109, %77 : vector<4x128xf32>
    %111 = arith.addf %108, %110 : vector<4x128xf32>
    %c0_50 = arith.constant 0 : index
    %c12 = arith.constant 12 : index
    %c0_51 = arith.constant 0 : index
    %112 = vector.load %arg4[%c0_50, %c12, %c0_51] : memref<1x16x128xf32, #tpu.memory_space<vmem>>, vector<1x4x128xf32>
    %113 = vector.shape_cast %112 : vector<1x4x128xf32> to vector<4x128xf32>
    %c0_52 = arith.constant 0 : index
    %c12_53 = arith.constant 12 : index
    %c0_54 = arith.constant 0 : index
    %114 = vector.load %arg5[%c0_52, %c12_53, %c0_54] : memref<1x16x128xf32, #tpu.memory_space<vmem>>, vector<1x4x128xf32>
    %115 = vector.shape_cast %114 : vector<1x4x128xf32> to vector<4x128xf32>
    %c0_55 = arith.constant 0 : index
    %c3 = arith.constant 3 : index
    %c0_56 = arith.constant 0 : index
    %116 = vector.load %arg2[%c0_55, %c3, %c0_56] : memref<1x8x128xf32, #tpu.memory_space<vmem>>, vector<1x1x128xf32>
    %117 = vector.shape_cast %116 : vector<1x1x128xf32> to vector<1x128xf32>
    %c0_57 = arith.constant 0 : index
    %c3_58 = arith.constant 3 : index
    %c0_59 = arith.constant 0 : index
    %118 = vector.load %arg3[%c0_57, %c3_58, %c0_59] : memref<1x8x128xf32, #tpu.memory_space<vmem>>, vector<1x1x128xf32>
    %119 = vector.shape_cast %118 : vector<1x1x128xf32> to vector<1x128xf32>
    %120 = vector.broadcast %117 : vector<1x128xf32> to vector<4x128xf32>
    %121 = arith.mulf %120, %113 : vector<4x128xf32>
    %122 = arith.addf %89, %121 : vector<4x128xf32>
    %123 = vector.broadcast %119 : vector<1x128xf32> to vector<4x128xf32>
    %124 = arith.mulf %123, %115 : vector<4x128xf32>
    %125 = arith.subf %122, %124 : vector<4x128xf32>
    %126 = vector.broadcast %117 : vector<1x128xf32> to vector<4x128xf32>
    %127 = arith.mulf %126, %115 : vector<4x128xf32>
    %128 = arith.addf %95, %127 : vector<4x128xf32>
    %129 = vector.broadcast %119 : vector<1x128xf32> to vector<4x128xf32>
    %130 = arith.mulf %129, %113 : vector<4x128xf32>
    %131 = arith.addf %128, %130 : vector<4x128xf32>
    %c0_60 = arith.constant 0 : index
    %c7 = arith.constant 7 : index
    %c0_61 = arith.constant 0 : index
    %132 = vector.load %arg2[%c0_60, %c7, %c0_61] : memref<1x8x128xf32, #tpu.memory_space<vmem>>, vector<1x1x128xf32>
    %133 = vector.shape_cast %132 : vector<1x1x128xf32> to vector<1x128xf32>
    %c0_62 = arith.constant 0 : index
    %c7_63 = arith.constant 7 : index
    %c0_64 = arith.constant 0 : index
    %134 = vector.load %arg3[%c0_62, %c7_63, %c0_64] : memref<1x8x128xf32, #tpu.memory_space<vmem>>, vector<1x1x128xf32>
    %135 = vector.shape_cast %134 : vector<1x1x128xf32> to vector<1x128xf32>
    %136 = vector.broadcast %133 : vector<1x128xf32> to vector<4x128xf32>
    %137 = arith.mulf %136, %113 : vector<4x128xf32>
    %138 = arith.addf %105, %137 : vector<4x128xf32>
    %139 = vector.broadcast %135 : vector<1x128xf32> to vector<4x128xf32>
    %140 = arith.mulf %139, %115 : vector<4x128xf32>
    %141 = arith.subf %138, %140 : vector<4x128xf32>
    %142 = vector.broadcast %133 : vector<1x128xf32> to vector<4x128xf32>
    %143 = arith.mulf %142, %115 : vector<4x128xf32>
    %144 = arith.addf %111, %143 : vector<4x128xf32>
    %145 = vector.broadcast %135 : vector<1x128xf32> to vector<4x128xf32>
    %146 = arith.mulf %145, %113 : vector<4x128xf32>
    %147 = arith.addf %144, %146 : vector<4x128xf32>
    %148 = tpu.concatenate %125, %141 in 0 : vector<4x128xf32>, vector<4x128xf32> -> vector<8x128xf32>
    %c0_65 = arith.constant 0 : index
    %c0_66 = arith.constant 0 : index
    %c0_67 = arith.constant 0 : index
    %149 = vector.load %arg6[%c0_65, %c0_66, %c0_67] : memref<1x8x128xf32, #tpu.memory_space<vmem>>, vector<1x8x128xf32>
    %150 = vector.shape_cast %149 : vector<1x8x128xf32> to vector<8x128xf32>
    %151 = vector.shape_cast %148 : vector<8x128xf32> to vector<1x8x128xf32>
    tpu.vector_store %arg6[%c0_65, %c0_66, %c0_67], %151 {strides = array<i32>} : memref<1x8x128xf32, #tpu.memory_space<vmem>>, vector<1x8x128xf32>,
    %152 = tpu.concatenate %131, %147 in 0 : vector<4x128xf32>, vector<4x128xf32> -> vector<8x128xf32>
    %c0_68 = arith.constant 0 : index
    %c0_69 = arith.constant 0 : index
    %c0_70 = arith.constant 0 : index
    %153 = vector.load %arg7[%c0_68, %c0_69, %c0_70] : memref<1x8x128xf32, #tpu.memory_space<vmem>>, vector<1x8x128xf32>
    %154 = vector.shape_cast %153 : vector<1x8x128xf32> to vector<8x128xf32>
    %155 = vector.shape_cast %152 : vector<8x128xf32> to vector<1x8x128xf32>
    tpu.vector_store %arg7[%c0_68, %c0_69, %c0_70], %155 {strides = array<i32>} : memref<1x8x128xf32, #tpu.memory_space<vmem>>, vector<1x8x128xf32>,
    return
  }
  func.func @transform_0(%arg0: i32, %arg1: i32) -> (i32, i32, i32) {
    %c0_i32 = arith.constant 0 : i32
    %c0_i32_0 = arith.constant 0 : i32
    return %arg0, %c0_i32, %arg1 : i32, i32, i32
  }
  func.func @transform_1(%arg0: i32, %arg1: i32) -> (i32, i32, i32) {
    %c0_i32 = arith.constant 0 : i32
    %c0_i32_0 = arith.constant 0 : i32
    return %arg0, %c0_i32, %arg1 : i32, i32, i32
  }
  func.func @transform_2(%arg0: i32, %arg1: i32) -> (i32, i32, i32) {
    %c0_i32 = arith.constant 0 : i32
    %c0_i32_0 = arith.constant 0 : i32
    return %arg0, %c0_i32, %arg1 : i32, i32, i32
  }
  func.func @transform_3(%arg0: i32, %arg1: i32) -> (i32, i32, i32) {
    %c0_i32 = arith.constant 0 : i32
    %c0_i32_0 = arith.constant 0 : i32
    return %arg0, %c0_i32, %arg1 : i32, i32, i32
  }
  func.func @transform_4(%arg0: i32, %arg1: i32) -> (i32, i32, i32) {
    %c0_i32 = arith.constant 0 : i32
    %c0_i32_0 = arith.constant 0 : i32
    return %arg0, %c0_i32, %arg1 : i32, i32, i32
  }
  func.func @transform_5(%arg0: i32, %arg1: i32) -> (i32, i32, i32) {
    %c0_i32 = arith.constant 0 : i32
    %c0_i32_0 = arith.constant 0 : i32
    return %arg0, %c0_i32, %arg1 : i32, i32, i32
  }
}

</mosaic_0001>

<bundles_post_ra>
// kernel: spectral_conv4d.1
= control target key start
LH: loop header
LB: loop body
LE: loop exit
PB: predicated region body
PF: predicated region fallthrough
CT: control target
= control target key end

     0   :  { %s800_s18 = smov 0   ;;  %s802_s19 = smov 0   ;;  %s883_s0 = inlined_call_operand.vmem [shape: f32[8,8,128], index: 0, kind: input, shape index: {}]   ;;  %s884_s1 = inlined_call_operand.vmem [shape: f32[8,8,128], index: 1, kind: input, shape index: {}]   ;;  %s885_s2 = inlined_call_operand.vmem [shape: f32[8,16,128], index: 2, kind: input, shape index: {}]   ;;  %s886_s3 = inlined_call_operand.vmem [shape: f32[8,16,128], index: 3, kind: input, shape index: {}]   ;;  %s887_s4 = inlined_call_operand.vmem [shape: f32[8,8,128], index: 4, kind: output, shape index: {0}]   ;;  %s888_s5 = inlined_call_operand.vmem [shape: f32[8,8,128], index: 5, kind: output, shape index: {1}]  }
   0x1   :  { %s804_s20 = smov 0  }
   0x2 LB: > { %s28_s21 = sadd.s32 1, %s764_s19  ;;  %p693_p0 = scmp.ge.s32.totalorder %s768_s20, 1  ;;  %s768_s20 = sphi %s804_s20, %s16_s20   ;;  %s764_s19 = sphi %s802_s19, %s890_s19   ;;  %s760_s18 = sphi %s800_s18, %s889_s18  }
   0x3   : > { %p30_p1 = scmp.ge.s32.totalorder %s28_s21, 8  ;;  %p254_p2 = scmp.lt.s32.totalorder %s768_s20, 9 }
   0x5   : > { %s892_s21 = smov (%p30_p1, %s28_s21), 0  ;;  %p255_p3 = pnand %p693_p0, %p254_p2 }
   0x6   : > { %p316_p4 = scmp.lt.s32.totalorder (!%p255_p3), %s760_s18, 7  ;;  %vm515_vm0 = vcmask (!%p255_p3), 1043456  }
   0x7   : > { %258 = sbr.rel (%p255_p3) target bundleno = 44 (0x2c), region = 36 }
   0xe   : > { %s894_s18 = smov (!%p316_p4, %s760_s18), 7 }
   0xf   : > { %s818_s22 = sshll.u32 %s894_s18, 3  ;;  %s720_s23 = sshll.u32 %s894_s18, 4 }
  0x10   : > { %s824_s26 = scalar_lea.vmem %s883_s0, %s818_s22  ;;  %s830_s29 = scalar_lea.vmem %s884_s1, %s818_s22 }
  0x11   : > { %s835_s7 = scalar_lea.vmem %s885_s2, %s720_s23  ;;  %s840_s10 = scalar_lea.vmem %s886_s3, %s720_s23  ;;  %v702_v0 = vld [vmem:[%s824_s26] ss:$0 sm:$0xff]  ;;  %v704_v2 = vld [vmem:[%s824_s26 + $0x4] ss:$0 sm:$0xff]  ;;  %v706_v12 = vld [vmem:[%s824_s26 + $0x1] ss:$0 sm:$0xff] }
  0x12   : > { %v703_v1 = vld [vmem:[%s830_s29] ss:$0 sm:$0xff]  ;;  %v705_v5 = vld [vmem:[%s830_s29 + $0x4] ss:$0 sm:$0xff]  ;;  %v707_v17 = vld [vmem:[%s830_s29 + $0x1] ss:$0 sm:$0xff]  ;;  %s352_s13 = scalar_lea.vmem %s887_s4, %s818_s22  ;;  %s359_s16 = scalar_lea.vmem %s888_s5, %s818_s22 }
  0x13   : > { %v360_v3 = vld [vmem:[%s835_s7] sm:$0xf]  ;;  %v398_v10 = vld [vmem:[%s835_s7 + $0x4] sm:$0xf]  ;;  %v436_v24 = vld [vmem:[%s835_s7 + $0x8] sm:$0xf] }
  0x14   : > { %v361_v4 = vld [vmem:[%s840_s10] sm:$0xf]  ;;  %v368_v6 = vmul.f32 %v702_v0, %v360_v3  ;;  %v378_v9 = vmul.f32 %v703_v1, %v360_v3  ;;  %v399_v11 = vld [vmem:[%s840_s10 + $0x4] sm:$0xf]  ;;  %v386_v13 = vmul.f32 %v704_v2, %v360_v3  ;;  %v396_v16 = vmul.f32 %v705_v5, %v360_v3  ;;  %v437_v25 = vld [vmem:[%s840_s10 + $0x8] sm:$0xf] }
  0x15   : > { %v374_v7 = vmul.f32 %v703_v1, %v361_v4  ;;  %v376_v8 = vmul.f32 %v702_v0, %v361_v4  ;;  %v392_v14 = vmul.f32 %v705_v5, %v361_v4  ;;  %v394_v15 = vmul.f32 %v704_v2, %v361_v4  ;;  %v708_v18 = vld [vmem:[%s824_s26 + $0x5] ss:$0 sm:$0xff]  ;;  %v710_v26 = vld [vmem:[%s824_s26 + $0x2] ss:$0 sm:$0xff]  ;;  %v712_v30 = vld [vmem:[%s824_s26 + $0x6] ss:$0 sm:$0xff] }
  0x16   : > { %v709_v19 = vld [vmem:[%s830_s29 + $0x5] ss:$0 sm:$0xff]  ;;  %v406_v21 = vmul.f32 %v706_v12, %v398_v10  ;;  %v412_v22 = vmul.f32 %v707_v17, %v399_v11  ;;  %v424_v23 = vmul.f32 %v708_v18, %v398_v10  ;;  %v711_v29 = vld [vmem:[%s830_s29 + $0x2] ss:$0 sm:$0xff]  ;;  %v713_v31 = vld [vmem:[%s830_s29 + $0x6] ss:$0 sm:$0xff]  ;;  %v444_v34 = vmul.f32 %v710_v26, %v436_v24 }
  0x17   : > { %v375_v20 = vsub.f32 %v368_v6, %v374_v7  ;;  %v393_v27 = vsub.f32 %v386_v13, %v392_v14  ;;  %v430_v28 = vmul.f32 %v709_v19, %v399_v11  ;;  %v379_v32 = vadd.f32 %v378_v9, %v376_v8  ;;  %v474_v36 = vld [vmem:[%s835_s7 + $0xc] sm:$0xf]  ;;  %v714_v37 = vld [vmem:[%s824_s26 + $0x3] ss:$0 sm:$0xff]  ;;  %v716_v40 = vld [vmem:[%s824_s26 + $0x7] ss:$0 sm:$0xff] }
  0x18   : > { %v450_v35 = vmul.f32 %v711_v29, %v437_v25  ;;  %v462_v39 = vmul.f32 %v712_v30, %v436_v24  ;;  %v397_v41 = vadd.f32 %v396_v16, %v394_v15  ;;  %v414_v42 = vmul.f32 %v706_v12, %v399_v11  ;;  %v715_v48 = vld [vmem:[%s830_s29 + $0x3] ss:$0 sm:$0xff]  ;;  %v717_v49 = vld [vmem:[%s830_s29 + $0x7] ss:$0 sm:$0xff]  ;;  %v475_v58 = vld [vmem:[%s840_s10 + $0xc] sm:$0xf] }
  0x19   : > { %v407_v33 = vadd.f32 %v406_v21, %v375_v20  ;;  %v425_v38 = vadd.f32 %v424_v23, %v393_v27  ;;  %v468_v44 = vmul.f32 %v713_v31, %v437_v25  ;;  %v482_v45 = vmul.f32 %v714_v37, %v474_v36 }
  0x1a   : > { %v500_v46 = vmul.f32 %v716_v40, %v474_v36  ;;  %v415_v50 = vadd.f32 %v414_v42, %v379_v32  ;;  %v416_v51 = vmul.f32 %v707_v17, %v398_v10  ;;  %v432_v52 = vmul.f32 %v708_v18, %v399_v11 }
  0x1b   : > { %v413_v43 = vsub.f32 %v407_v33, %v412_v22  ;;  %v431_v47 = vsub.f32 %v425_v38, %v430_v28  ;;  %v434_v54 = vmul.f32 %v709_v19, %v398_v10  ;;  %v452_v55 = vmul.f32 %v710_v26, %v437_v25 }
  0x1c   : > { %v454_v56 = vmul.f32 %v711_v29, %v436_v24  ;;  %v417_v59 = vadd.f32 %v416_v51, %v415_v50  ;;  %v433_v60 = vadd.f32 %v432_v52, %v397_v41  ;;  %v470_v61 = vmul.f32 %v712_v30, %v437_v25 }
  0x1d   : > { %v445_v53 = vadd.f32 %v444_v34, %v413_v43  ;;  %v463_v57 = vadd.f32 %v462_v39, %v431_v47  ;;  %v488_v63 = vmul.f32 %v715_v48, %v475_v58  ;;  %v506_v0 = vmul.f32 %v717_v49, %v475_v58 }
  0x1e   : > { %v472_v1 = vmul.f32 %v713_v31, %v436_v24  ;;  %v435_v3 = vadd.f32 %v434_v54, %v433_v60  ;;  %v453_v4 = vadd.f32 %v452_v55, %v417_v59  ;;  %v490_v5 = vmul.f32 %v714_v37, %v475_v58 }
  0x1f   : > { %v451_v62 = vsub.f32 %v445_v53, %v450_v35  ;;  %v469_v2 = vsub.f32 %v463_v57, %v468_v44  ;;  %v508_v10 = vmul.f32 %v716_v40, %v475_v58  ;;  %v492_v11 = vmul.f32 %v715_v48, %v474_v36 }
  0x20   : > { %v455_v8 = vadd.f32 %v454_v56, %v453_v4  ;;  %v471_v9 = vadd.f32 %v470_v61, %v435_v3  ;;  %v510_v12 = vmul.f32 %v717_v49, %v474_v36 }
  0x21   : > { %v483_v6 = vadd.f32 %v482_v45, %v451_v62  ;;  %v501_v7 = vadd.f32 %v500_v46, %v469_v2 }
  0x22   : > { %v473_v15 = vadd.f32 %v472_v1, %v471_v9  ;;  %v491_v16 = vadd.f32 %v490_v5, %v455_v8 }
  0x23   : > { %v489_v13 = vsub.f32 %v483_v6, %v488_v63  ;;  %v507_v14 = vsub.f32 %v501_v7, %v506_v0 }
  0x24   : > { %v509_v18 = vadd.f32 %v508_v10, %v473_v15  ;;  %v493_v20 = vadd.f32 %v492_v11, %v491_v16 }
  0x25   : > { %v513_v17 = vrot.slane %v507_v14, 4 }
  0x26   : > { %v511_v21 = vadd.f32 %v510_v12, %v509_v18 }
  0x27   : > { %v516_v19 = vsel %vm515_vm0, %v489_v13, %v513_v17 }
  0x28   : > { %517 = vst [vmem:[%s352_s13] sm:$0xff] %v516_v19  ;;  %v519_v22 = vrot.slane %v511_v21, 4 }
  0x2a   : > { %v521_v23 = vsel %vm515_vm0, %v493_v20, %v519_v22 }
  0x2b   : > { %522 = vst [vmem:[%s359_s16] sm:$0xff] %v521_v23 }
  0x2c PF: > { %s16_s20 = sadd.s32 1, %s768_s20   ;;  %s889_s18 = smov %s764_s19 }
  0x2d   : > { %p13_p5 = scmp.ge.s32.totalorder %s16_s20, 10   ;;  %s890_s19 = smov %s892_s21 }
  0x2f   :  { %15 = sbr.rel (!%p13_p5) target bundleno = 2 (0x2), region = 87 }

// kernel: reverse.1
= control target key start
LH: loop header
LB: loop body
LE: loop exit
PB: predicated region body
PF: predicated region fallthrough
CT: control target
= control target key end

     0   :  { %s1160_s0 = inlined_call_operand.vmem [shape: f32[2,4,6,6,6,2], index: 0, kind: input, shape index: {}]   ;;  %s1161_s1 = inlined_call_operand.vmem [shape: f32[2,4,6,6,6,2], index: 1, kind: output, shape index: {}]  }
   0x1   :  { %v384_v0 = vld [vmem:[%s1160_s0 + $0x8] sm:$0x3f]  ;;  %v399_v8 = vld [vmem:[%s1160_s0 + $0x18] sm:$0x3f]  ;;  %v193_v48 = vld [vmem:[%s1160_s0] sm:$0x3f] }
   0x2   :  { %v385_v1 = vld [vmem:[%s1160_s0 + $0x188] sm:$0x3f]  ;;  %4 = vst [vmem:[%s1161_s1] sm:$0xff] %v384_v0  ;;  %400 = vst [vmem:[%s1161_s1 + $0x10] sm:$0xff] %v399_v8  ;;  %v401_v9 = vld [vmem:[%s1160_s0 + $0x198] sm:$0x3f] }
   0x3   :  { %v387_v2 = vld [vmem:[%s1160_s0 + $0x68] sm:$0x3f]  ;;  %386 = vst [vmem:[%s1161_s1 + $0x180] sm:$0xff] %v385_v1  ;;  %v403_v10 = vld [vmem:[%s1160_s0 + $0x78] sm:$0x3f]  ;;  %402 = vst [vmem:[%s1161_s1 + $0x190] sm:$0xff] %v401_v9 }
   0x4   :  { %388 = vst [vmem:[%s1161_s1 + $0x60] sm:$0xff] %v387_v2  ;;  %v389_v3 = vld [vmem:[%s1160_s0 + $0x1e8] sm:$0x3f]  ;;  %v405_v11 = vld [vmem:[%s1160_s0 + $0x1f8] sm:$0x3f]  ;;  %404 = vst [vmem:[%s1161_s1 + $0x70] sm:$0xff] %v403_v10 }
   0x5   :  { %v391_v4 = vld [vmem:[%s1160_s0 + $0xc8] sm:$0x3f]  ;;  %390 = vst [vmem:[%s1161_s1 + $0x1e0] sm:$0xff] %v389_v3  ;;  %406 = vst [vmem:[%s1161_s1 + $0x1f0] sm:$0xff] %v405_v11  ;;  %v407_v12 = vld [vmem:[%s1160_s0 + $0xd8] sm:$0x3f] }
   0x6   :  { %v393_v5 = vld [vmem:[%s1160_s0 + $0x248] sm:$0x3f]  ;;  %392 = vst [vmem:[%s1161_s1 + $0xc0] sm:$0xff] %v391_v4  ;;  %v409_v13 = vld [vmem:[%s1160_s0 + $0x258] sm:$0x3f]  ;;  %408 = vst [vmem:[%s1161_s1 + $0xd0] sm:$0xff] %v407_v12 }
   0x7   :  { %394 = vst [vmem:[%s1161_s1 + $0x240] sm:$0xff] %v393_v5  ;;  %v395_v6 = vld [vmem:[%s1160_s0 + $0x128] sm:$0x3f]  ;;  %v411_v14 = vld [vmem:[%s1160_s0 + $0x138] sm:$0x3f]  ;;  %410 = vst [vmem:[%s1161_s1 + $0x250] sm:$0xff] %v409_v13 }
   0x8   :  { %v397_v7 = vld [vmem:[%s1160_s0 + $0x2a8] sm:$0x3f]  ;;  %396 = vst [vmem:[%s1161_s1 + $0x120] sm:$0xff] %v395_v6  ;;  %412 = vst [vmem:[%s1161_s1 + $0x130] sm:$0xff] %v411_v14  ;;  %v413_v15 = vld [vmem:[%s1160_s0 + $0x2b8] sm:$0x3f] }
   0x9   :  { %398 = vst [vmem:[%s1161_s1 + $0x2a0] sm:$0xff] %v397_v7  ;;  %v415_v16 = vld [vmem:[%s1160_s0 + $0x28] sm:$0x3f]  ;;  %414 = vst [vmem:[%s1161_s1 + $0x2b0] sm:$0xff] %v413_v15  ;;  %v431_v24 = vld [vmem:[%s1160_s0 + $0x38] sm:$0x3f] }
   0xa   :  { %v417_v17 = vld [vmem:[%s1160_s0 + $0x1a8] sm:$0x3f]  ;;  %416 = vst [vmem:[%s1161_s1 + $0x20] sm:$0xff] %v415_v16  ;;  %v433_v25 = vld [vmem:[%s1160_s0 + $0x1b8] sm:$0x3f]  ;;  %432 = vst [vmem:[%s1161_s1 + $0x30] sm:$0xff] %v431_v24 }
   0xb   :  { %418 = vst [vmem:[%s1161_s1 + $0x1a0] sm:$0xff] %v417_v17  ;;  %v419_v18 = vld [vmem:[%s1160_s0 + $0x88] sm:$0x3f]  ;;  %v435_v26 = vld [vmem:[%s1160_s0 + $0x98] sm:$0x3f]  ;;  %434 = vst [vmem:[%s1161_s1 + $0x1b0] sm:$0xff] %v433_v25 }
   0xc   :  { %v421_v19 = vld [vmem:[%s1160_s0 + $0x208] sm:$0x3f]  ;;  %420 = vst [vmem:[%s1161_s1 + $0x80] sm:$0xff] %v419_v18  ;;  %436 = vst [vmem:[%s1161_s1 + $0x90] sm:$0xff] %v435_v26  ;;  %v437_v27 = vld [vmem:[%s1160_s0 + $0x218] sm:$0x3f] }
   0xd   :  { %v423_v20 = vld [vmem:[%s1160_s0 + $0xe8] sm:$0x3f]  ;;  %422 = vst [vmem:[%s1161_s1 + $0x200] sm:$0xff] %v421_v19  ;;  %v439_v28 = vld [vmem:[%s1160_s0 + $0xf8] sm:$0x3f]  ;;  %438 = vst [vmem:[%s1161_s1 + $0x210] sm:$0xff] %v437_v27 }
   0xe   :  { %424 = vst [vmem:[%s1161_s1 + $0xe0] sm:$0xff] %v423_v20  ;;  %v425_v21 = vld [vmem:[%s1160_s0 + $0x268] sm:$0x3f]  ;;  %v441_v29 = vld [vmem:[%s1160_s0 + $0x278] sm:$0x3f]  ;;  %440 = vst [vmem:[%s1161_s1 + $0xf0] sm:$0xff] %v439_v28 }
   0xf   :  { %v427_v22 = vld [vmem:[%s1160_s0 + $0x148] sm:$0x3f]  ;;  %426 = vst [vmem:[%s1161_s1 + $0x260] sm:$0xff] %v425_v21  ;;  %442 = vst [vmem:[%s1161_s1 + $0x270] sm:$0xff] %v441_v29  ;;  %v443_v30 = vld [vmem:[%s1160_s0 + $0x158] sm:$0x3f] }
  0x10   :  { %v429_v23 = vld [vmem:[%s1160_s0 + $0x2c8] sm:$0x3f]  ;;  %428 = vst [vmem:[%s1161_s1 + $0x140] sm:$0xff] %v427_v22  ;;  %v445_v31 = vld [vmem:[%s1160_s0 + $0x2d8] sm:$0x3f]  ;;  %444 = vst [vmem:[%s1161_s1 + $0x150] sm:$0xff] %v443_v30 }
  0x11   :  { %430 = vst [vmem:[%s1161_s1 + $0x2c0] sm:$0xff] %v429_v23  ;;  %v447_v32 = vld [vmem:[%s1160_s0 + $0x48] sm:$0x3f]  ;;  %446 = vst [vmem:[%s1161_s1 + $0x2d0] sm:$0xff] %v445_v31  ;;  %v463_v40 = vld [vmem:[%s1160_s0 + $0x58] sm:$0x3f] }
  0x12   :  { %448 = vst [vmem:[%s1161_s1 + $0x40] sm:$0xff] %v447_v32  ;;  %v449_v33 = vld [vmem:[%s1160_s0 + $0x1c8] sm:$0x3f]  ;;  %v465_v41 = vld [vmem:[%s1160_s0 + $0x1d8] sm:$0x3f]  ;;  %464 = vst [vmem:[%s1161_s1 + $0x50] sm:$0xff] %v463_v40 }
  0x13   :  { %v451_v34 = vld [vmem:[%s1160_s0 + $0xa8] sm:$0x3f]  ;;  %450 = vst [vmem:[%s1161_s1 + $0x1c0] sm:$0xff] %v449_v33  ;;  %466 = vst [vmem:[%s1161_s1 + $0x1d0] sm:$0xff] %v465_v41  ;;  %v467_v42 = vld [vmem:[%s1160_s0 + $0xb8] sm:$0x3f] }
  0x14   :  { %v453_v35 = vld [vmem:[%s1160_s0 + $0x228] sm:$0x3f]  ;;  %452 = vst [vmem:[%s1161_s1 + $0xa0] sm:$0xff] %v451_v34  ;;  %v469_v43 = vld [vmem:[%s1160_s0 + $0x238] sm:$0x3f]  ;;  %468 = vst [vmem:[%s1161_s1 + $0xb0] sm:$0xff] %v467_v42 }
  0x15   :  { %454 = vst [vmem:[%s1161_s1 + $0x220] sm:$0xff] %v453_v35  ;;  %v455_v36 = vld [vmem:[%s1160_s0 + $0x108] sm:$0x3f]  ;;  %v471_v44 = vld [vmem:[%s1160_s0 + $0x118] sm:$0x3f]  ;;  %470 = vst [vmem:[%s1161_s1 + $0x230] sm:$0xff] %v469_v43 }
  0x16   :  { %v457_v37 = vld [vmem:[%s1160_s0 + $0x288] sm:$0x3f]  ;;  %456 = vst [vmem:[%s1161_s1 + $0x100] sm:$0xff] %v455_v36  ;;  %472 = vst [vmem:[%s1161_s1 + $0x110] sm:$0xff] %v471_v44  ;;  %v473_v45 = vld [vmem:[%s1160_s0 + $0x298] sm:$0x3f] }
  0x17   :  { %v459_v38 = vld [vmem:[%s1160_s0 + $0x168] sm:$0x3f]  ;;  %458 = vst [vmem:[%s1161_s1 + $0x280] sm:$0xff] %v457_v37  ;;  %v475_v46 = vld [vmem:[%s1160_s0 + $0x178] sm:$0x3f]  ;;  %474 = vst [vmem:[%s1161_s1 + $0x290] sm:$0xff] %v473_v45 }
  0x18   :  { %460 = vst [vmem:[%s1161_s1 + $0x160] sm:$0xff] %v459_v38  ;;  %v461_v39 = vld [vmem:[%s1160_s0 + $0x2e8] sm:$0x3f]  ;;  %v477_v47 = vld [vmem:[%s1160_s0 + $0x2f8] sm:$0x3f]  ;;  %476 = vst [vmem:[%s1161_s1 + $0x170] sm:$0xff] %v475_v46 }
  0x19   :  { %462 = vst [vmem:[%s1161_s1 + $0x2e0] sm:$0xff] %v461_v39  ;;  %478 = vst [vmem:[%s1161_s1 + $0x2f0] sm:$0xff] %v477_v47  ;;  %v480_v49 = vld [vmem:[%s1160_s0 + $0x180] sm:$0x3f]  ;;  %v494_v56 = vld [vmem:[%s1160_s0 + $0x10] sm:$0x3f] }
  0x1a   :  { %v482_v50 = vld [vmem:[%s1160_s0 + $0x60] sm:$0x3f]  ;;  %479 = vst [vmem:[%s1161_s1 + $0x8] sm:$0xff] %v193_v48  ;;  %481 = vst [vmem:[%s1161_s1 + $0x188] sm:$0xff] %v480_v49  ;;  %v496_v57 = vld [vmem:[%s1160_s0 + $0x190] sm:$0x3f] }
  0x1b   :  { %483 = vst [vmem:[%s1161_s1 + $0x68] sm:$0xff] %v482_v50  ;;  %v484_v51 = vld [vmem:[%s1160_s0 + $0x1e0] sm:$0x3f]  ;;  %495 = vst [vmem:[%s1161_s1 + $0x18] sm:$0xff] %v494_v56  ;;  %v498_v58 = vld [vmem:[%s1160_s0 + $0x70] sm:$0x3f] }
  0x1c   :  { %v486_v52 = vld [vmem:[%s1160_s0 + $0xc0] sm:$0x3f]  ;;  %485 = vst [vmem:[%s1161_s1 + $0x1e8] sm:$0xff] %v484_v51  ;;  %v500_v59 = vld [vmem:[%s1160_s0 + $0x1f0] sm:$0x3f]  ;;  %497 = vst [vmem:[%s1161_s1 + $0x198] sm:$0xff] %v496_v57 }
  0x1d   :  { %v488_v53 = vld [vmem:[%s1160_s0 + $0x240] sm:$0x3f]  ;;  %487 = vst [vmem:[%s1161_s1 + $0xc8] sm:$0xff] %v486_v52  ;;  %499 = vst [vmem:[%s1161_s1 + $0x78] sm:$0xff] %v498_v58  ;;  %v502_v60 = vld [vmem:[%s1160_s0 + $0xd0] sm:$0x3f] }
  0x1e   :  { %489 = vst [vmem:[%s1161_s1 + $0x248] sm:$0xff] %v488_v53  ;;  %v490_v54 = vld [vmem:[%s1160_s0 + $0x120] sm:$0x3f]  ;;  %501 = vst [vmem:[%s1161_s1 + $0x1f8] sm:$0xff] %v500_v59  ;;  %v504_v61 = vld [vmem:[%s1160_s0 + $0x250] sm:$0x3f] }
  0x1f   :  { %v492_v55 = vld [vmem:[%s1160_s0 + $0x2a0] sm:$0x3f]  ;;  %491 = vst [vmem:[%s1161_s1 + $0x128] sm:$0xff] %v490_v54  ;;  %v506_v62 = vld [vmem:[%s1160_s0 + $0x130] sm:$0x3f]  ;;  %503 = vst [vmem:[%s1161_s1 + $0xd8] sm:$0xff] %v502_v60 }
  0x20   :  { %493 = vst [vmem:[%s1161_s1 + $0x2a8] sm:$0xff] %v492_v55  ;;  %505 = vst [vmem:[%s1161_s1 + $0x258] sm:$0xff] %v504_v61  ;;  %v508_v63 = vld [vmem:[%s1160_s0 + $0x2b0] sm:$0x3f]  ;;  %v510_v0 = vld [vmem:[%s1160_s0 + $0x20] sm:$0x3f] }
  0x21   :  { %507 = vst [vmem:[%s1161_s1 + $0x138] sm:$0xff] %v506_v62  ;;  %v512_v1 = vld [vmem:[%s1160_s0 + $0x1a0] sm:$0x3f]  ;;  %509 = vst [vmem:[%s1161_s1 + $0x2b8] sm:$0xff] %v508_v63  ;;  %v526_v8 = vld [vmem:[%s1160_s0 + $0x30] sm:$0x3f] }
  0x22   :  { %511 = vst [vmem:[%s1161_s1 + $0x28] sm:$0xff] %v510_v0  ;;  %513 = vst [vmem:[%s1161_s1 + $0x1a8] sm:$0xff] %v512_v1  ;;  %v514_v2 = vld [vmem:[%s1160_s0 + $0x80] sm:$0x3f]  ;;  %v528_v9 = vld [vmem:[%s1160_s0 + $0x1b0] sm:$0x3f] }
  0x23   :  { %v516_v3 = vld [vmem:[%s1160_s0 + $0x200] sm:$0x3f]  ;;  %515 = vst [vmem:[%s1161_s1 + $0x88] sm:$0xff] %v514_v2  ;;  %v530_v10 = vld [vmem:[%s1160_s0 + $0x90] sm:$0x3f]  ;;  %527 = vst [vmem:[%s1161_s1 + $0x38] sm:$0xff] %v526_v8 }
  0x24   :  { %v518_v4 = vld [vmem:[%s1160_s0 + $0xe0] sm:$0x3f]  ;;  %517 = vst [vmem:[%s1161_s1 + $0x208] sm:$0xff] %v516_v3  ;;  %529 = vst [vmem:[%s1161_s1 + $0x1b8] sm:$0xff] %v528_v9  ;;  %v532_v11 = vld [vmem:[%s1160_s0 + $0x210] sm:$0x3f] }
  0x25   :  { %519 = vst [vmem:[%s1161_s1 + $0xe8] sm:$0xff] %v518_v4  ;;  %v520_v5 = vld [vmem:[%s1160_s0 + $0x260] sm:$0x3f]  ;;  %531 = vst [vmem:[%s1161_s1 + $0x98] sm:$0xff] %v530_v10  ;;  %v534_v12 = vld [vmem:[%s1160_s0 + $0xf0] sm:$0x3f] }
  0x26   :  { %v522_v6 = vld [vmem:[%s1160_s0 + $0x140] sm:$0x3f]  ;;  %521 = vst [vmem:[%s1161_s1 + $0x268] sm:$0xff] %v520_v5  ;;  %v536_v13 = vld [vmem:[%s1160_s0 + $0x270] sm:$0x3f]  ;;  %533 = vst [vmem:[%s1161_s1 + $0x218] sm:$0xff] %v532_v11 }
  0x27   :  { %v524_v7 = vld [vmem:[%s1160_s0 + $0x2c0] sm:$0x3f]  ;;  %523 = vst [vmem:[%s1161_s1 + $0x148] sm:$0xff] %v522_v6  ;;  %535 = vst [vmem:[%s1161_s1 + $0xf8] sm:$0xff] %v534_v12  ;;  %v538_v14 = vld [vmem:[%s1160_s0 + $0x150] sm:$0x3f] }
  0x28   :  { %525 = vst [vmem:[%s1161_s1 + $0x2c8] sm:$0xff] %v524_v7  ;;  %537 = vst [vmem:[%s1161_s1 + $0x278] sm:$0xff] %v536_v13  ;;  %v540_v15 = vld [vmem:[%s1160_s0 + $0x2d0] sm:$0x3f]  ;;  %v542_v16 = vld [vmem:[%s1160_s0 + $0x40] sm:$0x3f] }
  0x29   :  { %539 = vst [vmem:[%s1161_s1 + $0x158] sm:$0xff] %v538_v14  ;;  %541 = vst [vmem:[%s1161_s1 + $0x2d8] sm:$0xff] %v540_v15  ;;  %v544_v17 = vld [vmem:[%s1160_s0 + $0x1c0] sm:$0x3f]  ;;  %v558_v24 = vld [vmem:[%s1160_s0 + $0x50] sm:$0x3f] }
  0x2a   :  { %543 = vst [vmem:[%s1161_s1 + $0x48] sm:$0xff] %v542_v16  ;;  %v546_v18 = vld [vmem:[%s1160_s0 + $0xa0] sm:$0x3f]  ;;  %545 = vst [vmem:[%s1161_s1 + $0x1c8] sm:$0xff] %v544_v17  ;;  %v560_v25 = vld [vmem:[%s1160_s0 + $0x1d0] sm:$0x3f] }
  0x2b   :  { %v548_v19 = vld [vmem:[%s1160_s0 + $0x220] sm:$0x3f]  ;;  %547 = vst [vmem:[%s1161_s1 + $0xa8] sm:$0xff] %v546_v18  ;;  %559 = vst [vmem:[%s1161_s1 + $0x58] sm:$0xff] %v558_v24  ;;  %v562_v26 = vld [vmem:[%s1160_s0 + $0xb0] sm:$0x3f] }
  0x2c   :  { %549 = vst [vmem:[%s1161_s1 + $0x228] sm:$0xff] %v548_v19  ;;  %v550_v20 = vld [vmem:[%s1160_s0 + $0x100] sm:$0x3f]  ;;  %561 = vst [vmem:[%s1161_s1 + $0x1d8] sm:$0xff] %v560_v25  ;;  %v564_v27 = vld [vmem:[%s1160_s0 + $0x230] sm:$0x3f] }
  0x2d   :  { %v552_v21 = vld [vmem:[%s1160_s0 + $0x280] sm:$0x3f]  ;;  %551 = vst [vmem:[%s1161_s1 + $0x108] sm:$0xff] %v550_v20  ;;  %v566_v28 = vld [vmem:[%s1160_s0 + $0x110] sm:$0x3f]  ;;  %563 = vst [vmem:[%s1161_s1 + $0xb8] sm:$0xff] %v562_v26 }
  0x2e   :  { %v554_v22 = vld [vmem:[%s1160_s0 + $0x160] sm:$0x3f]  ;;  %553 = vst [vmem:[%s1161_s1 + $0x288] sm:$0xff] %v552_v21  ;;  %565 = vst [vmem:[%s1161_s1 + $0x238] sm:$0xff] %v564_v27  ;;  %v568_v29 = vld [vmem:[%s1160_s0 + $0x290] sm:$0x3f] }
  0x2f   :  { %555 = vst [vmem:[%s1161_s1 + $0x168] sm:$0xff] %v554_v22  ;;  %v556_v23 = vld [vmem:[%s1160_s0 + $0x2e0] sm:$0x3f]  ;;  %567 = vst [vmem:[%s1161_s1 + $0x118] sm:$0xff] %v566_v28  ;;  %v570_v30 = vld [vmem:[%s1160_s0 + $0x170] sm:$0x3f] }
  0x30   :  { %557 = vst [vmem:[%s1161_s1 + $0x2e8] sm:$0xff] %v556_v23  ;;  %v572_v31 = vld [vmem:[%s1160_s0 + $0x2f0] sm:$0x3f]  ;;  %569 = vst [vmem:[%s1161_s1 + $0x298] sm:$0xff] %v568_v29 }
  0x31   :  { %571 = vst [vmem:[%s1161_s1 + $0x178] sm:$0xff] %v570_v30  ;;  %573 = vst [vmem:[%s1161_s1 + $0x2f8] sm:$0xff] %v572_v31 }

</bundles_post_ra>
